<compile_context>
chip_gen: v6e
topology: v6e:2x2x1
jax: 0.10.0
libtpu: 0.0.40
codegen_flags: <defaults>
</compile_context>

<pallas_src>
import functools

import jax
import jax.numpy as jnp
from jax.experimental import pallas as pl
from jax.experimental.pallas import tpu as pltpu


def _embedding_gather_kernel(T, ids_ref, table_hbm, out_ref, copy_sems):
    """Gathers T embedding rows (HBM table -> (T, H) VMEM output tile)."""
    base = pl.program_id(0) * T

    # Start all T row-gather DMAs first so many (H,)-row HBM reads are in
    # flight concurrently (approaches HBM bandwidth instead of serializing
    # per-descriptor latency) ...
    for t in range(T):
        pltpu.make_async_copy(
            table_hbm.at[ids_ref[base + t]],  # dynamic (H,) row of the table
            out_ref.at[t],                    # row t of the (T, H) output tile
            copy_sems.at[t],
        ).start()

    # ... then wait for all of them before the tile is written back by the
    # output pipeline. (The wait descriptor only needs matching shapes.)
    for t in range(T):
        pltpu.make_async_copy(
            table_hbm.at[0],
            out_ref.at[t],
            copy_sems.at[t],
        ).wait()


def embedding_lookup(input_ids: jax.Array, table: jax.Array,
                     *, block_tokens: int = 64) -> jax.Array:
    """Gather rows of `table` (vocab, hidden) for every id in `input_ids`."""
    V, H = table.shape
    T = int(block_tokens)
    assert T % 8 == 0, "block_tokens must be a multiple of 8 (sublane density)"

    # Clamp out-of-range ids so the data-dependent DMA can never run OOB.
    flat_ids = jnp.clip(input_ids.reshape(-1).astype(jnp.int32), 0, V - 1)
    n = flat_ids.shape[0]

    # Pad the token count up to a multiple of T (padding gathers row 0).
    n_pad = -(-n // T) * T
    if n_pad != n:
        flat_ids = jnp.concatenate(
            [flat_ids, jnp.zeros((n_pad - n,), jnp.int32)])

    out_flat = pl.pallas_call(
        functools.partial(_embedding_gather_kernel, T),
        out_shape=jax.ShapeDtypeStruct((n_pad, H), table.dtype),
        grid_spec=pltpu.PrefetchScalarGridSpec(
            num_scalar_prefetch=1,                 # flat_ids -> SMEM
            grid=(n_pad // T,),
            in_specs=[
                # Embedding table stays in HBM; rows are gathered manually.
                pl.BlockSpec(memory_space=pl.ANY),
            ],
            out_specs=pl.BlockSpec((T, H), lambda i, ids: (i, 0)),
            scratch_shapes=[
                pltpu.SemaphoreType.DMA((T,)),     # one sem per in-flight row
            ],
        ),
        compiler_params=pltpu.CompilerParams(
            # Disjoint output blocks per step -> safe to shard across cores.
            dimension_semantics=("parallel",),
        ),
    )(flat_ids, table)

    return out_flat[:n].reshape(*input_ids.shape, H)


if __name__ == "__main__":
    # Small deterministic setup (real ChatGLM3: vocab=65024, hidden=4096).
    VOCAB = 256
    HIDDEN = 128
    BATCH = 2
    SEQ = 8

    key = jax.random.PRNGKey(0)
    k_tab, k_ids = jax.random.split(key)

    table = jax.random.normal(k_tab, (VOCAB, HIDDEN), dtype=jnp.float32)
    input_ids = jax.random.randint(k_ids, (BATCH, SEQ), 0, VOCAB, dtype=jnp.int32)

    ref = jnp.take(table, input_ids, axis=0)

    # (a) small block -> multi-step grid, no padding (16 tokens / 8 per step).
    out = jax.block_until_ready(embedding_lookup(input_ids, table, block_tokens=8))
    assert out.shape == (BATCH, SEQ, HIDDEN), out.shape
    assert out.dtype == jnp.float32, out.dtype
    assert jnp.array_equal(out, ref), "mismatch vs reference gather (T=8)"

    # (b) production-style block size -> exercises the token-padding path.
    out2 = jax.block_until_ready(embedding_lookup(input_ids, table, block_tokens=64))
    assert jnp.array_equal(out2, ref), "mismatch vs reference gather (T=64)"

    print("KERNEL_OK")
</pallas_src>

<mosaic_0001>
module attributes {stable_mosaic.version = 11 : i64} {
  func.func @_embedding_gather_kernel(%arg0: i32, %arg1: memref<16xi32, #tpu.memory_space<smem>>, %arg2: memref<256x128xf32, #tpu.memory_space<any>>, %arg3: memref<8x128xf32, #tpu.memory_space<vmem>>, %arg4: memref<8x!tpu.dma_semaphore, #tpu.memory_space<semaphore_mem>>) attributes {dimension_semantics = [#tpu.dimension_semantics<parallel>], iteration_bounds = array<i64: 2>, scalar_prefetch = 1 : i64, scratch_operands = 1 : i64, tpu.core_type = #tpu.core_type<tc>, window_params = [{}, {transform_indices = @transform_1, window_bounds = array<i64: 8, 128>}]} {
    %c8_i32 = arith.constant 8 : i32
    %0 = arith.muli %arg0, %c8_i32 : i32
    %c0_i32 = arith.constant 0 : i32
    %1 = arith.addi %0, %c0_i32 : i32
    %2 = arith.index_cast %1 : i32 to index
    %3 = memref.load %arg1[%2] : memref<16xi32, #tpu.memory_space<smem>>
    %c0_i32_0 = arith.constant 0 : i32
    %c0_i32_1 = arith.constant 0 : i32
    %c0_i32_2 = arith.constant 0 : i32
    %4 = tpu.memref_slice %arg2[%3, %c0_i32_2] : memref<256x128xf32, #tpu.memory_space<any>> -> memref<1x128xf32, #tpu.memory_space<any>>
    %5 = tpu.memref_squeeze %4 : memref<1x128xf32, #tpu.memory_space<any>> -> memref<128xf32, #tpu.memory_space<any>>
    %c0_i32_3 = arith.constant 0 : i32
    %6 = tpu.memref_slice %arg3[%c0_i32_0, %c0_i32_3] : memref<8x128xf32, #tpu.memory_space<vmem>> -> memref<1x128xf32, #tpu.memory_space<vmem>>
    %7 = tpu.memref_squeeze %6 : memref<1x128xf32, #tpu.memory_space<vmem>> -> memref<128xf32, #tpu.memory_space<vmem>>
    %8 = tpu.memref_slice %arg4[%c0_i32_1] : memref<8x!tpu.dma_semaphore, #tpu.memory_space<semaphore_mem>> -> memref<1x!tpu.dma_semaphore, #tpu.memory_space<semaphore_mem>>
    %9 = tpu.memref_squeeze %8 : memref<1x!tpu.dma_semaphore, #tpu.memory_space<semaphore_mem>> -> memref<!tpu.dma_semaphore, #tpu.memory_space<semaphore_mem>>
    tpu.enqueue_dma source(%5 : memref<128xf32, #tpu.memory_space<any>>) target(%7 : memref<128xf32, #tpu.memory_space<vmem>>) target_semaphore(%9 : memref<!tpu.dma_semaphore, #tpu.memory_space<semaphore_mem>>)
    %c1_i32 = arith.constant 1 : i32
    %10 = arith.addi %0, %c1_i32 : i32
    %11 = arith.index_cast %10 : i32 to index
    %12 = memref.load %arg1[%11] : memref<16xi32, #tpu.memory_space<smem>>
    %c1_i32_4 = arith.constant 1 : i32
    %c1_i32_5 = arith.constant 1 : i32
    %c0_i32_6 = arith.constant 0 : i32
    %13 = tpu.memref_slice %arg2[%12, %c0_i32_6] : memref<256x128xf32, #tpu.memory_space<any>> -> memref<1x128xf32, #tpu.memory_space<any>>
    %14 = tpu.memref_squeeze %13 : memref<1x128xf32, #tpu.memory_space<any>> -> memref<128xf32, #tpu.memory_space<any>>
    %c0_i32_7 = arith.constant 0 : i32
    %15 = tpu.memref_slice %arg3[%c1_i32_4, %c0_i32_7] : memref<8x128xf32, #tpu.memory_space<vmem>> -> memref<1x128xf32, #tpu.memory_space<vmem>>
    %16 = tpu.memref_squeeze %15 : memref<1x128xf32, #tpu.memory_space<vmem>> -> memref<128xf32, #tpu.memory_space<vmem>>
    %17 = tpu.memref_slice %arg4[%c1_i32_5] : memref<8x!tpu.dma_semaphore, #tpu.memory_space<semaphore_mem>> -> memref<1x!tpu.dma_semaphore, #tpu.memory_space<semaphore_mem>>
    %18 = tpu.memref_squeeze %17 : memref<1x!tpu.dma_semaphore, #tpu.memory_space<semaphore_mem>> -> memref<!tpu.dma_semaphore, #tpu.memory_space<semaphore_mem>>
    tpu.enqueue_dma source(%14 : memref<128xf32, #tpu.memory_space<any>>) target(%16 : memref<128xf32, #tpu.memory_space<vmem>>) target_semaphore(%18 : memref<!tpu.dma_semaphore, #tpu.memory_space<semaphore_mem>>)
    %c2_i32 = arith.constant 2 : i32
    %19 = arith.addi %0, %c2_i32 : i32
    %20 = arith.index_cast %19 : i32 to index
    %21 = memref.load %arg1[%20] : memref<16xi32, #tpu.memory_space<smem>>
    %c2_i32_8 = arith.constant 2 : i32
    %c2_i32_9 = arith.constant 2 : i32
    %c0_i32_10 = arith.constant 0 : i32
    %22 = tpu.memref_slice %arg2[%21, %c0_i32_10] : memref<256x128xf32, #tpu.memory_space<any>> -> memref<1x128xf32, #tpu.memory_space<any>>
    %23 = tpu.memref_squeeze %22 : memref<1x128xf32, #tpu.memory_space<any>> -> memref<128xf32, #tpu.memory_space<any>>
    %c0_i32_11 = arith.constant 0 : i32
    %24 = tpu.memref_slice %arg3[%c2_i32_8, %c0_i32_11] : memref<8x128xf32, #tpu.memory_space<vmem>> -> memref<1x128xf32, #tpu.memory_space<vmem>>
    %25 = tpu.memref_squeeze %24 : memref<1x128xf32, #tpu.memory_space<vmem>> -> memref<128xf32, #tpu.memory_space<vmem>>
    %26 = tpu.memref_slice %arg4[%c2_i32_9] : memref<8x!tpu.dma_semaphore, #tpu.memory_space<semaphore_mem>> -> memref<1x!tpu.dma_semaphore, #tpu.memory_space<semaphore_mem>>
    %27 = tpu.memref_squeeze %26 : memref<1x!tpu.dma_semaphore, #tpu.memory_space<semaphore_mem>> -> memref<!tpu.dma_semaphore, #tpu.memory_space<semaphore_mem>>
    tpu.enqueue_dma source(%23 : memref<128xf32, #tpu.memory_space<any>>) target(%25 : memref<128xf32, #tpu.memory_space<vmem>>) target_semaphore(%27 : memref<!tpu.dma_semaphore, #tpu.memory_space<semaphore_mem>>)
    %c3_i32 = arith.constant 3 : i32
    %28 = arith.addi %0, %c3_i32 : i32
    %29 = arith.index_cast %28 : i32 to index
    %30 = memref.load %arg1[%29] : memref<16xi32, #tpu.memory_space<smem>>
    %c3_i32_12 = arith.constant 3 : i32
    %c3_i32_13 = arith.constant 3 : i32
    %c0_i32_14 = arith.constant 0 : i32
    %31 = tpu.memref_slice %arg2[%30, %c0_i32_14] : memref<256x128xf32, #tpu.memory_space<any>> -> memref<1x128xf32, #tpu.memory_space<any>>
    %32 = tpu.memref_squeeze %31 : memref<1x128xf32, #tpu.memory_space<any>> -> memref<128xf32, #tpu.memory_space<any>>
    %c0_i32_15 = arith.constant 0 : i32
    %33 = tpu.memref_slice %arg3[%c3_i32_12, %c0_i32_15] : memref<8x128xf32, #tpu.memory_space<vmem>> -> memref<1x128xf32, #tpu.memory_space<vmem>>
    %34 = tpu.memref_squeeze %33 : memref<1x128xf32, #tpu.memory_space<vmem>> -> memref<128xf32, #tpu.memory_space<vmem>>
    %35 = tpu.memref_slice %arg4[%c3_i32_13] : memref<8x!tpu.dma_semaphore, #tpu.memory_space<semaphore_mem>> -> memref<1x!tpu.dma_semaphore, #tpu.memory_space<semaphore_mem>>
    %36 = tpu.memref_squeeze %35 : memref<1x!tpu.dma_semaphore, #tpu.memory_space<semaphore_mem>> -> memref<!tpu.dma_semaphore, #tpu.memory_space<semaphore_mem>>
    tpu.enqueue_dma source(%32 : memref<128xf32, #tpu.memory_space<any>>) target(%34 : memref<128xf32, #tpu.memory_space<vmem>>) target_semaphore(%36 : memref<!tpu.dma_semaphore, #tpu.memory_space<semaphore_mem>>)
    %c4_i32 = arith.constant 4 : i32
    %37 = arith.addi %0, %c4_i32 : i32
    %38 = arith.index_cast %37 : i32 to index
    %39 = memref.load %arg1[%38] : memref<16xi32, #tpu.memory_space<smem>>
    %c4_i32_16 = arith.constant 4 : i32
    %c4_i32_17 = arith.constant 4 : i32
    %c0_i32_18 = arith.constant 0 : i32
    %40 = tpu.memref_slice %arg2[%39, %c0_i32_18] : memref<256x128xf32, #tpu.memory_space<any>> -> memref<1x128xf32, #tpu.memory_space<any>>
    %41 = tpu.memref_squeeze %40 : memref<1x128xf32, #tpu.memory_space<any>> -> memref<128xf32, #tpu.memory_space<any>>
    %c0_i32_19 = arith.constant 0 : i32
    %42 = tpu.memref_slice %arg3[%c4_i32_16, %c0_i32_19] : memref<8x128xf32, #tpu.memory_space<vmem>> -> memref<1x128xf32, #tpu.memory_space<vmem>>
    %43 = tpu.memref_squeeze %42 : memref<1x128xf32, #tpu.memory_space<vmem>> -> memref<128xf32, #tpu.memory_space<vmem>>
    %44 = tpu.memref_slice %arg4[%c4_i32_17] : memref<8x!tpu.dma_semaphore, #tpu.memory_space<semaphore_mem>> -> memref<1x!tpu.dma_semaphore, #tpu.memory_space<semaphore_mem>>
    %45 = tpu.memref_squeeze %44 : memref<1x!tpu.dma_semaphore, #tpu.memory_space<semaphore_mem>> -> memref<!tpu.dma_semaphore, #tpu.memory_space<semaphore_mem>>
    tpu.enqueue_dma source(%41 : memref<128xf32, #tpu.memory_space<any>>) target(%43 : memref<128xf32, #tpu.memory_space<vmem>>) target_semaphore(%45 : memref<!tpu.dma_semaphore, #tpu.memory_space<semaphore_mem>>)
    %c5_i32 = arith.constant 5 : i32
    %46 = arith.addi %0, %c5_i32 : i32
    %47 = arith.index_cast %46 : i32 to index
    %48 = memref.load %arg1[%47] : memref<16xi32, #tpu.memory_space<smem>>
    %c5_i32_20 = arith.constant 5 : i32
    %c5_i32_21 = arith.constant 5 : i32
    %c0_i32_22 = arith.constant 0 : i32
    %49 = tpu.memref_slice %arg2[%48, %c0_i32_22] : memref<256x128xf32, #tpu.memory_space<any>> -> memref<1x128xf32, #tpu.memory_space<any>>
    %50 = tpu.memref_squeeze %49 : memref<1x128xf32, #tpu.memory_space<any>> -> memref<128xf32, #tpu.memory_space<any>>
    %c0_i32_23 = arith.constant 0 : i32
    %51 = tpu.memref_slice %arg3[%c5_i32_20, %c0_i32_23] : memref<8x128xf32, #tpu.memory_space<vmem>> -> memref<1x128xf32, #tpu.memory_space<vmem>>
    %52 = tpu.memref_squeeze %51 : memref<1x128xf32, #tpu.memory_space<vmem>> -> memref<128xf32, #tpu.memory_space<vmem>>
    %53 = tpu.memref_slice %arg4[%c5_i32_21] : memref<8x!tpu.dma_semaphore, #tpu.memory_space<semaphore_mem>> -> memref<1x!tpu.dma_semaphore, #tpu.memory_space<semaphore_mem>>
    %54 = tpu.memref_squeeze %53 : memref<1x!tpu.dma_semaphore, #tpu.memory_space<semaphore_mem>> -> memref<!tpu.dma_semaphore, #tpu.memory_space<semaphore_mem>>
    tpu.enqueue_dma source(%50 : memref<128xf32, #tpu.memory_space<any>>) target(%52 : memref<128xf32, #tpu.memory_space<vmem>>) target_semaphore(%54 : memref<!tpu.dma_semaphore, #tpu.memory_space<semaphore_mem>>)
    %c6_i32 = arith.constant 6 : i32
    %55 = arith.addi %0, %c6_i32 : i32
    %56 = arith.index_cast %55 : i32 to index
    %57 = memref.load %arg1[%56] : memref<16xi32, #tpu.memory_space<smem>>
    %c6_i32_24 = arith.constant 6 : i32
    %c6_i32_25 = arith.constant 6 : i32
    %c0_i32_26 = arith.constant 0 : i32
    %58 = tpu.memref_slice %arg2[%57, %c0_i32_26] : memref<256x128xf32, #tpu.memory_space<any>> -> memref<1x128xf32, #tpu.memory_space<any>>
    %59 = tpu.memref_squeeze %58 : memref<1x128xf32, #tpu.memory_space<any>> -> memref<128xf32, #tpu.memory_space<any>>
    %c0_i32_27 = arith.constant 0 : i32
    %60 = tpu.memref_slice %arg3[%c6_i32_24, %c0_i32_27] : memref<8x128xf32, #tpu.memory_space<vmem>> -> memref<1x128xf32, #tpu.memory_space<vmem>>
    %61 = tpu.memref_squeeze %60 : memref<1x128xf32, #tpu.memory_space<vmem>> -> memref<128xf32, #tpu.memory_space<vmem>>
    %62 = tpu.memref_slice %arg4[%c6_i32_25] : memref<8x!tpu.dma_semaphore, #tpu.memory_space<semaphore_mem>> -> memref<1x!tpu.dma_semaphore, #tpu.memory_space<semaphore_mem>>
    %63 = tpu.memref_squeeze %62 : memref<1x!tpu.dma_semaphore, #tpu.memory_space<semaphore_mem>> -> memref<!tpu.dma_semaphore, #tpu.memory_space<semaphore_mem>>
    tpu.enqueue_dma source(%59 : memref<128xf32, #tpu.memory_space<any>>) target(%61 : memref<128xf32, #tpu.memory_space<vmem>>) target_semaphore(%63 : memref<!tpu.dma_semaphore, #tpu.memory_space<semaphore_mem>>)
    %c7_i32 = arith.constant 7 : i32
    %64 = arith.addi %0, %c7_i32 : i32
    %65 = arith.index_cast %64 : i32 to index
    %66 = memref.load %arg1[%65] : memref<16xi32, #tpu.memory_space<smem>>
    %c7_i32_28 = arith.constant 7 : i32
    %c7_i32_29 = arith.constant 7 : i32
    %c0_i32_30 = arith.constant 0 : i32
    %67 = tpu.memref_slice %arg2[%66, %c0_i32_30] : memref<256x128xf32, #tpu.memory_space<any>> -> memref<1x128xf32, #tpu.memory_space<any>>
    %68 = tpu.memref_squeeze %67 : memref<1x128xf32, #tpu.memory_space<any>> -> memref<128xf32, #tpu.memory_space<any>>
    %c0_i32_31 = arith.constant 0 : i32
    %69 = tpu.memref_slice %arg3[%c7_i32_28, %c0_i32_31] : memref<8x128xf32, #tpu.memory_space<vmem>> -> memref<1x128xf32, #tpu.memory_space<vmem>>
    %70 = tpu.memref_squeeze %69 : memref<1x128xf32, #tpu.memory_space<vmem>> -> memref<128xf32, #tpu.memory_space<vmem>>
    %71 = tpu.memref_slice %arg4[%c7_i32_29] : memref<8x!tpu.dma_semaphore, #tpu.memory_space<semaphore_mem>> -> memref<1x!tpu.dma_semaphore, #tpu.memory_space<semaphore_mem>>
    %72 = tpu.memref_squeeze %71 : memref<1x!tpu.dma_semaphore, #tpu.memory_space<semaphore_mem>> -> memref<!tpu.dma_semaphore, #tpu.memory_space<semaphore_mem>>
    tpu.enqueue_dma source(%68 : memref<128xf32, #tpu.memory_space<any>>) target(%70 : memref<128xf32, #tpu.memory_space<vmem>>) target_semaphore(%72 : memref<!tpu.dma_semaphore, #tpu.memory_space<semaphore_mem>>)
    %c0_i32_32 = arith.constant 0 : i32
    %c0_i32_33 = arith.constant 0 : i32
    %c0_i32_34 = arith.constant 0 : i32
    %c0_i32_35 = arith.constant 0 : i32
    %73 = tpu.memref_slice %arg2[%c0_i32_32, %c0_i32_35] : memref<256x128xf32, #tpu.memory_space<any>> -> memref<1x128xf32, #tpu.memory_space<any>>
    %74 = tpu.memref_squeeze %73 : memref<1x128xf32, #tpu.memory_space<any>> -> memref<128xf32, #tpu.memory_space<any>>
    %c0_i32_36 = arith.constant 0 : i32
    %75 = tpu.memref_slice %arg3[%c0_i32_33, %c0_i32_36] : memref<8x128xf32, #tpu.memory_space<vmem>> -> memref<1x128xf32, #tpu.memory_space<vmem>>
    %76 = tpu.memref_squeeze %75 : memref<1x128xf32, #tpu.memory_space<vmem>> -> memref<128xf32, #tpu.memory_space<vmem>>
    %77 = tpu.memref_slice %arg4[%c0_i32_34] : memref<8x!tpu.dma_semaphore, #tpu.memory_space<semaphore_mem>> -> memref<1x!tpu.dma_semaphore, #tpu.memory_space<semaphore_mem>>
    %78 = tpu.memref_squeeze %77 : memref<1x!tpu.dma_semaphore, #tpu.memory_space<semaphore_mem>> -> memref<!tpu.dma_semaphore, #tpu.memory_space<semaphore_mem>>
    tpu.wait_dma2 semaphore(%78 : memref<!tpu.dma_semaphore, #tpu.memory_space<semaphore_mem>>) src(%74 : memref<128xf32, #tpu.memory_space<any>>) dst(%76 : memref<128xf32, #tpu.memory_space<vmem>>)
    %c0_i32_37 = arith.constant 0 : i32
    %c1_i32_38 = arith.constant 1 : i32
    %c1_i32_39 = arith.constant 1 : i32
    %c0_i32_40 = arith.constant 0 : i32
    %79 = tpu.memref_slice %arg2[%c0_i32_37, %c0_i32_40] : memref<256x128xf32, #tpu.memory_space<any>> -> memref<1x128xf32, #tpu.memory_space<any>>
    %80 = tpu.memref_squeeze %79 : memref<1x128xf32, #tpu.memory_space<any>> -> memref<128xf32, #tpu.memory_space<any>>
    %c0_i32_41 = arith.constant 0 : i32
    %81 = tpu.memref_slice %arg3[%c1_i32_38, %c0_i32_41] : memref<8x128xf32, #tpu.memory_space<vmem>> -> memref<1x128xf32, #tpu.memory_space<vmem>>
    %82 = tpu.memref_squeeze %81 : memref<1x128xf32, #tpu.memory_space<vmem>> -> memref<128xf32, #tpu.memory_space<vmem>>
    %83 = tpu.memref_slice %arg4[%c1_i32_39] : memref<8x!tpu.dma_semaphore, #tpu.memory_space<semaphore_mem>> -> memref<1x!tpu.dma_semaphore, #tpu.memory_space<semaphore_mem>>
    %84 = tpu.memref_squeeze %83 : memref<1x!tpu.dma_semaphore, #tpu.memory_space<semaphore_mem>> -> memref<!tpu.dma_semaphore, #tpu.memory_space<semaphore_mem>>
    tpu.wait_dma2 semaphore(%84 : memref<!tpu.dma_semaphore, #tpu.memory_space<semaphore_mem>>) src(%80 : memref<128xf32, #tpu.memory_space<any>>) dst(%82 : memref<128xf32, #tpu.memory_space<vmem>>)
    %c0_i32_42 = arith.constant 0 : i32
    %c2_i32_43 = arith.constant 2 : i32
    %c2_i32_44 = arith.constant 2 : i32
    %c0_i32_45 = arith.constant 0 : i32
    %85 = tpu.memref_slice %arg2[%c0_i32_42, %c0_i32_45] : memref<256x128xf32, #tpu.memory_space<any>> -> memref<1x128xf32, #tpu.memory_space<any>>
    %86 = tpu.memref_squeeze %85 : memref<1x128xf32, #tpu.memory_space<any>> -> memref<128xf32, #tpu.memory_space<any>>
    %c0_i32_46 = arith.constant 0 : i32
    %87 = tpu.memref_slice %arg3[%c2_i32_43, %c0_i32_46] : memref<8x128xf32, #tpu.memory_space<vmem>> -> memref<1x128xf32, #tpu.memory_space<vmem>>
    %88 = tpu.memref_squeeze %87 : memref<1x128xf32, #tpu.memory_space<vmem>> -> memref<128xf32, #tpu.memory_space<vmem>>
    %89 = tpu.memref_slice %arg4[%c2_i32_44] : memref<8x!tpu.dma_semaphore, #tpu.memory_space<semaphore_mem>> -> memref<1x!tpu.dma_semaphore, #tpu.memory_space<semaphore_mem>>
    %90 = tpu.memref_squeeze %89 : memref<1x!tpu.dma_semaphore, #tpu.memory_space<semaphore_mem>> -> memref<!tpu.dma_semaphore, #tpu.memory_space<semaphore_mem>>
    tpu.wait_dma2 semaphore(%90 : memref<!tpu.dma_semaphore, #tpu.memory_space<semaphore_mem>>) src(%86 : memref<128xf32, #tpu.memory_space<any>>) dst(%88 : memref<128xf32, #tpu.memory_space<vmem>>)
    %c0_i32_47 = arith.constant 0 : i32
    %c3_i32_48 = arith.constant 3 : i32
    %c3_i32_49 = arith.constant 3 : i32
    %c0_i32_50 = arith.constant 0 : i32
    %91 = tpu.memref_slice %arg2[%c0_i32_47, %c0_i32_50] : memref<256x128xf32, #tpu.memory_space<any>> -> memref<1x128xf32, #tpu.memory_space<any>>
    %92 = tpu.memref_squeeze %91 : memref<1x128xf32, #tpu.memory_space<any>> -> memref<128xf32, #tpu.memory_space<any>>
    %c0_i32_51 = arith.constant 0 : i32
    %93 = tpu.memref_slice %arg3[%c3_i32_48, %c0_i32_51] : memref<8x128xf32, #tpu.memory_space<vmem>> -> memref<1x128xf32, #tpu.memory_space<vmem>>
    %94 = tpu.memref_squeeze %93 : memref<1x128xf32, #tpu.memory_space<vmem>> -> memref<128xf32, #tpu.memory_space<vmem>>
    %95 = tpu.memref_slice %arg4[%c3_i32_49] : memref<8x!tpu.dma_semaphore, #tpu.memory_space<semaphore_mem>> -> memref<1x!tpu.dma_semaphore, #tpu.memory_space<semaphore_mem>>
    %96 = tpu.memref_squeeze %95 : memref<1x!tpu.dma_semaphore, #tpu.memory_space<semaphore_mem>> -> memref<!tpu.dma_semaphore, #tpu.memory_space<semaphore_mem>>
    tpu.wait_dma2 semaphore(%96 : memref<!tpu.dma_semaphore, #tpu.memory_space<semaphore_mem>>) src(%92 : memref<128xf32, #tpu.memory_space<any>>) dst(%94 : memref<128xf32, #tpu.memory_space<vmem>>)
    %c0_i32_52 = arith.constant 0 : i32
    %c4_i32_53 = arith.constant 4 : i32
    %c4_i32_54 = arith.constant 4 : i32
    %c0_i32_55 = arith.constant 0 : i32
    %97 = tpu.memref_slice %arg2[%c0_i32_52, %c0_i32_55] : memref<256x128xf32, #tpu.memory_space<any>> -> memref<1x128xf32, #tpu.memory_space<any>>
    %98 = tpu.memref_squeeze %97 : memref<1x128xf32, #tpu.memory_space<any>> -> memref<128xf32, #tpu.memory_space<any>>
    %c0_i32_56 = arith.constant 0 : i32
    %99 = tpu.memref_slice %arg3[%c4_i32_53, %c0_i32_56] : memref<8x128xf32, #tpu.memory_space<vmem>> -> memref<1x128xf32, #tpu.memory_space<vmem>>
    %100 = tpu.memref_squeeze %99 : memref<1x128xf32, #tpu.memory_space<vmem>> -> memref<128xf32, #tpu.memory_space<vmem>>
    %101 = tpu.memref_slice %arg4[%c4_i32_54] : memref<8x!tpu.dma_semaphore, #tpu.memory_space<semaphore_mem>> -> memref<1x!tpu.dma_semaphore, #tpu.memory_space<semaphore_mem>>
    %102 = tpu.memref_squeeze %101 : memref<1x!tpu.dma_semaphore, #tpu.memory_space<semaphore_mem>> -> memref<!tpu.dma_semaphore, #tpu.memory_space<semaphore_mem>>
    tpu.wait_dma2 semaphore(%102 : memref<!tpu.dma_semaphore, #tpu.memory_space<semaphore_mem>>) src(%98 : memref<128xf32, #tpu.memory_space<any>>) dst(%100 : memref<128xf32, #tpu.memory_space<vmem>>)
    %c0_i32_57 = arith.constant 0 : i32
    %c5_i32_58 = arith.constant 5 : i32
    %c5_i32_59 = arith.constant 5 : i32
    %c0_i32_60 = arith.constant 0 : i32
    %103 = tpu.memref_slice %arg2[%c0_i32_57, %c0_i32_60] : memref<256x128xf32, #tpu.memory_space<any>> -> memref<1x128xf32, #tpu.memory_space<any>>
    %104 = tpu.memref_squeeze %103 : memref<1x128xf32, #tpu.memory_space<any>> -> memref<128xf32, #tpu.memory_space<any>>
    %c0_i32_61 = arith.constant 0 : i32
    %105 = tpu.memref_slice %arg3[%c5_i32_58, %c0_i32_61] : memref<8x128xf32, #tpu.memory_space<vmem>> -> memref<1x128xf32, #tpu.memory_space<vmem>>
    %106 = tpu.memref_squeeze %105 : memref<1x128xf32, #tpu.memory_space<vmem>> -> memref<128xf32, #tpu.memory_space<vmem>>
    %107 = tpu.memref_slice %arg4[%c5_i32_59] : memref<8x!tpu.dma_semaphore, #tpu.memory_space<semaphore_mem>> -> memref<1x!tpu.dma_semaphore, #tpu.memory_space<semaphore_mem>>
    %108 = tpu.memref_squeeze %107 : memref<1x!tpu.dma_semaphore, #tpu.memory_space<semaphore_mem>> -> memref<!tpu.dma_semaphore, #tpu.memory_space<semaphore_mem>>
    tpu.wait_dma2 semaphore(%108 : memref<!tpu.dma_semaphore, #tpu.memory_space<semaphore_mem>>) src(%104 : memref<128xf32, #tpu.memory_space<any>>) dst(%106 : memref<128xf32, #tpu.memory_space<vmem>>)
    %c0_i32_62 = arith.constant 0 : i32
    %c6_i32_63 = arith.constant 6 : i32
    %c6_i32_64 = arith.constant 6 : i32
    %c0_i32_65 = arith.constant 0 : i32
    %109 = tpu.memref_slice %arg2[%c0_i32_62, %c0_i32_65] : memref<256x128xf32, #tpu.memory_space<any>> -> memref<1x128xf32, #tpu.memory_space<any>>
    %110 = tpu.memref_squeeze %109 : memref<1x128xf32, #tpu.memory_space<any>> -> memref<128xf32, #tpu.memory_space<any>>
    %c0_i32_66 = arith.constant 0 : i32
    %111 = tpu.memref_slice %arg3[%c6_i32_63, %c0_i32_66] : memref<8x128xf32, #tpu.memory_space<vmem>> -> memref<1x128xf32, #tpu.memory_space<vmem>>
    %112 = tpu.memref_squeeze %111 : memref<1x128xf32, #tpu.memory_space<vmem>> -> memref<128xf32, #tpu.memory_space<vmem>>
    %113 = tpu.memref_slice %arg4[%c6_i32_64] : memref<8x!tpu.dma_semaphore, #tpu.memory_space<semaphore_mem>> -> memref<1x!tpu.dma_semaphore, #tpu.memory_space<semaphore_mem>>
    %114 = tpu.memref_squeeze %113 : memref<1x!tpu.dma_semaphore, #tpu.memory_space<semaphore_mem>> -> memref<!tpu.dma_semaphore, #tpu.memory_space<semaphore_mem>>
    tpu.wait_dma2 semaphore(%114 : memref<!tpu.dma_semaphore, #tpu.memory_space<semaphore_mem>>) src(%110 : memref<128xf32, #tpu.memory_space<any>>) dst(%112 : memref<128xf32, #tpu.memory_space<vmem>>)
    %c0_i32_67 = arith.constant 0 : i32
    %c7_i32_68 = arith.constant 7 : i32
    %c7_i32_69 = arith.constant 7 : i32
    %c0_i32_70 = arith.constant 0 : i32
    %115 = tpu.memref_slice %arg2[%c0_i32_67, %c0_i32_70] : memref<256x128xf32, #tpu.memory_space<any>> -> memref<1x128xf32, #tpu.memory_space<any>>
    %116 = tpu.memref_squeeze %115 : memref<1x128xf32, #tpu.memory_space<any>> -> memref<128xf32, #tpu.memory_space<any>>
    %c0_i32_71 = arith.constant 0 : i32
    %117 = tpu.memref_slice %arg3[%c7_i32_68, %c0_i32_71] : memref<8x128xf32, #tpu.memory_space<vmem>> -> memref<1x128xf32, #tpu.memory_space<vmem>>
    %118 = tpu.memref_squeeze %117 : memref<1x128xf32, #tpu.memory_space<vmem>> -> memref<128xf32, #tpu.memory_space<vmem>>
    %119 = tpu.memref_slice %arg4[%c7_i32_69] : memref<8x!tpu.dma_semaphore, #tpu.memory_space<semaphore_mem>> -> memref<1x!tpu.dma_semaphore, #tpu.memory_space<semaphore_mem>>
    %120 = tpu.memref_squeeze %119 : memref<1x!tpu.dma_semaphore, #tpu.memory_space<semaphore_mem>> -> memref<!tpu.dma_semaphore, #tpu.memory_space<semaphore_mem>>
    tpu.wait_dma2 semaphore(%120 : memref<!tpu.dma_semaphore, #tpu.memory_space<semaphore_mem>>) src(%116 : memref<128xf32, #tpu.memory_space<any>>) dst(%118 : memref<128xf32, #tpu.memory_space<vmem>>)
    return
  }
  func.func @transform_1(%arg0: i32, %arg1: memref<16xi32, #tpu.memory_space<smem>>) -> (i32, i32) {
    %c0_i32 = arith.constant 0 : i32
    %c0_i32_0 = arith.constant 0 : i32
    return %arg0, %c0_i32 : i32, i32
  }
}

</mosaic_0001>

<bundles_post_ra>
// kernel: tpu_custom_call.1
= control target key start
LH: loop header
LB: loop body
LE: loop exit
PB: predicated region body
PF: predicated region fallthrough
CT: control target
= control target key end

     0   :  { %s730_s9 = smov [#allocation4]   ;;  %s1099_s0 = inlined_call_operand.hbm [shape: s32[16], index: 0, kind: input, shape index: {}]   ;;  %s1100_s1 = inlined_call_operand.hbm [shape: f32[256,128], index: 1, kind: input, shape index: {}]   ;;  %s1101_s2 = inlined_call_operand.hbm [shape: f32[16,128], index: 2, kind: output, shape index: {}]  }
   0x1   :  { %8 = dma.hbm_to_smem %s1099_s0, 16, %s730_s9, [#allocation3] }
   0x2   :  { %680 = dma.done.wait [#allocation3], 16 }
   0x3   :  { %681 = vsyncadd [#allocation3], 4294967280 }
   0x4   :  { %10 = sfence }
   0x5   :  { %11 = vsyncpa [#allocation6], 0 }
   0x6   :  { %13 = vsyncpa [#allocation6 + $0x1], 0  ;;  %s750_s12 = smov 0   ;;  %s752_s13 = smov 0  }
   0x7   :  { %s754_s14 = smov 0  }
   0x8 LB: > { %s330_s0 = sadd.s32 4294967295, %s728_s14   ;;  %s767_s15 = sadd.s32 1, %s728_s14   ;;  %s728_s14 = sphi %s754_s14, %s1111_s14   ;;  %s724_s13 = sphi %s752_s13, %s1110_s13   ;;  %s720_s12 = sphi %s750_s12, %s1109_s12  }
   0x9   : > { %s22_s16 = ssub.s32 %s728_s14, %s767_s15  ;;  %s25_s17 = sadd.s32 1, %s724_s13 }
   0xa   : > { %p23_p0 = scmp.eq.s32.totalorder %s22_s16, 0  ;;  %p331_p1 = scmp.ne.s32.totalorder %s22_s16, 0 }
   0xb   : > { %p29_p2 = scmp.eq.s32.totalorder %s728_s14, 1  ;;  %p34_p3 = scmp.ne.s32.totalorder %s724_s13, %s720_s12 }
   0xc   : > { %s776_s18 = scalar_select %p23_p0, %s724_s13, %s25_s17  }
   0xd   : > { %p778_p4 = por %p331_p1, %p29_p2  ;;  %p35_p5 = scmp.eq.s32.totalorder %s330_s0, 1 }
   0xe   : > { %p397_p6 = scmp.lt.s32.totalorder %s728_s14, 2  ;;  %s49_s21 = sand.u32 1, %s724_s13  }
   0xf   : > { %p783_p7 = por %p35_p5, %p34_p3  ;;  %s333_s22 = sshll.u32 %s49_s21, 3 }
  0x10   : > { %s791_s23 = sshll.u32 %s728_s14, 3  ;;  %s799_s27 = scalar_lea.vmem [#allocation5], %s333_s22 }
  0x11   : > { %s1104_s20 = scalar_select %p783_p7, 1, 0 }
  0x12   : > { %s67_s24 = sadd.s32 1, %s791_s23  ;;  %s63_s28 = sshll.u32 %s799_s27, 4  ;;  %s803_s28 = int_to_ptr.vmem [resolvable:$true] %s63_s28 }
  0x13   : > { %s358_s25 = scalar_select %p397_p6, [#allocation4], [#allocation25] }
  0x14   : > { %s359_s26 = scalar_select %p397_p6, %s791_s23, 0 }
  0x15   : > { %s71_s29 = scalar_lea.vmem %s799_s27, 1 [#allocation5]  ;;  %s1113_s24 = smov (!%p397_p6, %s67_s24), 0 }
  0x16   : > { %s53_s30 = sld [smem:[%s358_s25 + %s359_s26]]  ;;  %s80_s4 = sshll.u32 %s71_s29, 4  ;;  %s812_s4 = int_to_ptr.vmem [resolvable:$true] %s80_s4 }
  0x17   : > { %s361_s3 = scalar_select %p397_p6, [#allocation4], [#allocation26] }
  0x18   : > { %s84_s5 = sadd.s32 2, %s791_s23  ;;  %s88_s9 = scalar_lea.vmem %s799_s27, 2 [#allocation5] }
  0x19   : > { %s810_s6 = sld [smem:[%s361_s3 + %s1113_s24]]  ;;  %s97_s16 = sshll.u32 %s88_s9, 4  ;;  %s856_s16 = int_to_ptr.vmem [resolvable:$true] %s97_s16 }
  0x1a   : > { %s816_s7 = scalar_select %p397_p6, [#allocation4], [#allocation27] }
  0x1b   : > { %s827_s25 = scalar_lea.hbm %s1100_s1, 4096 }
  0x1c   : > { %s335_s8 = sshll.u32 %s53_s30, 4 }
  0x1d   : > { %s55_s0 = scalar_lea.hbm %s1100_s1, %s335_s8 }
  0x1e   : > { %s432_s17 = scalar_lea.hbm %s55_s0, 16  ;;  %p437_p11 = scmp.lt.s32.totalorder %s55_s0, %s1100_s1 }
  0x1f   : > { %p433_p8 = scmp.ne.s32.totalorder %s55_s0, %s432_s17  ;;  %p438_p12 = scmp.lt.s32.totalorder %s827_s25, %s432_s17 }
  0x21   : > { %p434_p9 = pnand %p433_p8, %p397_p6  ;;  %p439_p13 = por %p438_p12, %p437_p11 }
  0x23   : > { %p435_p10 = pneg %p434_p9 }
  0x25   : > { %p440_p0 = pnand %p439_p13, %p435_p10 }
  0x27   : > { %443 = shalt.err (!%p440_p0)  }
  0x28   : > { %s444_s30 = scalar_lea.vmem %s803_s28, 16  ;;  %s731_s3 = smov [#allocation5]  }
  0x29   : > { %p445_p1 = scmp.ne.s32.totalorder %s803_s28, %s444_s30  ;;  %s448_s8 = sshll.u32 %s731_s3, 4  ;;  %s837_s8 = int_to_ptr.vmem [resolvable:$false] %s448_s8 }
  0x2a   : > { %s840_s9 = scalar_lea.vmem %s837_s8, 256  ;;  %p1102_p5 = scmp.lt.s32.totalorder %s803_s28, %s837_s8 }
  0x2b   : > { %p446_p2 = pnand %p445_p1, %p397_p6  ;;  %p452_p8 = scmp.lt.s32.totalorder %s840_s9, %s444_s30 }
  0x2d   : > { %p447_p3 = pneg %p446_p2  ;;  %p453_p9 = por %p452_p8, %p1102_p5 }
  0x2f   : > { %p454_p10 = pnand %p453_p9, %p447_p3 }
  0x31   : > { %457 = shalt.err (!%p454_p10)  }
  0x32   : > { %360 = dma.hbm_to_vmem [thread:$0]  (%p397_p6), %s55_s0, 16, %s803_s28, [#allocation2] }
  0x33   : > { %s1115_s5 = smov (!%p397_p6, %s84_s5), 0  ;;  %s336_s10 = sshll.u32 %s810_s6, 4 }
  0x34   : > { %s70_s22 = scalar_lea.hbm %s1100_s1, %s336_s10  ;;  %s862_s24 = sld [smem:[%s816_s7 + %s1115_s5]] }
  0x35   : > { %s458_s26 = scalar_lea.hbm %s70_s22, 16  ;;  %p463_p0 = scmp.lt.s32.totalorder %s70_s22, %s1100_s1 }
  0x36   : > { %p459_p11 = scmp.ne.s32.totalorder %s70_s22, %s458_s26  ;;  %p464_p1 = scmp.lt.s32.totalorder %s827_s25, %s458_s26 }
  0x38   : > { %p460_p12 = pnand %p459_p11, %p397_p6  ;;  %p465_p2 = por %p464_p1, %p463_p0 }
  0x3a   : > { %p461_p13 = pneg %p460_p12 }
  0x3c   : > { %p466_p3 = pnand %p465_p2, %p461_p13 }
  0x3e   : > { %469 = shalt.err (!%p466_p3)  }
  0x3f   : > { %s470_s5 = scalar_lea.vmem %s812_s4, 16  ;;  %p477_p11 = scmp.lt.s32.totalorder %s812_s4, %s837_s8 }
  0x40   : > { %p471_p8 = scmp.ne.s32.totalorder %s812_s4, %s470_s5  ;;  %p478_p12 = scmp.lt.s32.totalorder %s840_s9, %s470_s5 }
  0x42   : > { %p472_p9 = pnand %p471_p8, %p397_p6  ;;  %p479_p5 = por %p478_p12, %p477_p11 }
  0x44   : > { %p473_p10 = pneg %p472_p9 }
  0x46   : > { %p480_p7 = pnand %p479_p5, %p473_p10 }
  0x48   : > { %483 = shalt.err (!%p480_p7)  }
  0x49   : > { %363 = dma.hbm_to_vmem [thread:$0]  (%p397_p6), %s70_s22, 16, %s812_s4, [#allocation2 + $0x1] }
  0x4a   : > { %s101_s6 = sadd.s32 3, %s791_s23  ;;  %s105_s7 = scalar_lea.vmem %s799_s27, 3 [#allocation5] }
  0x4b   : > { %s367_s0 = scalar_select %p397_p6, [#allocation4], [#allocation28] }
  0x4c   : > { %s1117_s6 = smov (!%p397_p6, %s101_s6), 0  ;;  %s114_s3 = sshll.u32 %s105_s7, 4  ;;  %s893_s3 = int_to_ptr.vmem [resolvable:$true] %s114_s3 }
  0x4d   : > { %s118_s10 = sadd.s32 4, %s791_s23  ;;  %s337_s11 = sshll.u32 %s862_s24, 4 }
  0x4e   : > { %s888_s17 = sld [smem:[%s367_s0 + %s1117_s6]]  ;;  %s87_s30 = scalar_lea.hbm %s1100_s1, %s337_s11 }
  0x4f   : > { %s484_s5 = scalar_lea.hbm %s87_s30, 16  ;;  %p489_p0 = scmp.lt.s32.totalorder %s87_s30, %s1100_s1 }
  0x50   : > { %p485_p7 = scmp.ne.s32.totalorder %s87_s30, %s484_s5  ;;  %p490_p1 = scmp.lt.s32.totalorder %s827_s25, %s484_s5 }
  0x52   : > { %p486_p5 = pnand %p485_p7, %p397_p6  ;;  %p491_p2 = por %p490_p1, %p489_p0 }
  0x54   : > { %p487_p13 = pneg %p486_p5 }
  0x56   : > { %p492_p3 = pnand %p491_p2, %p487_p13 }
  0x58   : > { %495 = shalt.err (!%p492_p3)  }
  0x59   : > { %s496_s24 = scalar_lea.vmem %s856_s16, 16  ;;  %p503_p11 = scmp.lt.s32.totalorder %s856_s16, %s837_s8 }
  0x5a   : > { %p497_p8 = scmp.ne.s32.totalorder %s856_s16, %s496_s24  ;;  %p504_p12 = scmp.lt.s32.totalorder %s840_s9, %s496_s24 }
  0x5c   : > { %p498_p9 = pnand %p497_p8, %p397_p6  ;;  %p505_p7 = por %p504_p12, %p503_p11 }
  0x5e   : > { %p499_p10 = pneg %p498_p9 }
  0x60   : > { %p506_p5 = pnand %p505_p7, %p499_p10 }
  0x62   : > { %509 = shalt.err (!%p506_p5)  }
  0x63   : > { %366 = dma.hbm_to_vmem [thread:$0]  (%p397_p6), %s87_s30, 16, %s856_s16, [#allocation2 + $0x2] }
  0x64   : > { %s370_s6 = scalar_select %p397_p6, [#allocation4], [#allocation29] }
  0x65   : > { %s1119_s10 = smov (!%p397_p6, %s118_s10), 0  ;;  %s122_s7 = scalar_lea.vmem %s799_s27, 4 [#allocation5] }
  0x66   : > { %s135_s0 = sadd.s32 5, %s791_s23  ;;  %s338_s11 = sshll.u32 %s888_s17, 4 }
  0x67   : > { %s918_s26 = sld [smem:[%s370_s6 + %s1119_s10]]  ;;  %s104_s4 = scalar_lea.hbm %s1100_s1, %s338_s11 }
  0x68   : > { %s131_s22 = sshll.u32 %s122_s7, 4  ;;  %s510_s24 = scalar_lea.hbm %s104_s4, 16  ;;  %s132_s22 = int_to_ptr.vmem [resolvable:$true] %s131_s22 }
  0x69   : > { %p511_p13 = scmp.ne.s32.totalorder %s104_s4, %s510_s24  ;;  %p515_p2 = scmp.lt.s32.totalorder %s104_s4, %s1100_s1 }
  0x6a   : > { %p516_p3 = scmp.lt.s32.totalorder %s827_s25, %s510_s24 }
  0x6b   : > { %p512_p0 = pnand %p511_p13, %p397_p6 }
  0x6c   : > { %p517_p8 = por %p516_p3, %p515_p2 }
  0x6d   : > { %p513_p1 = pneg %p512_p0 }
  0x6f   : > { %p518_p9 = pnand %p517_p8, %p513_p1 }
  0x71   : > { %521 = shalt.err (!%p518_p9)  }
  0x72   : > { %s522_s10 = scalar_lea.vmem %s893_s3, 16  ;;  %p529_p7 = scmp.lt.s32.totalorder %s893_s3, %s837_s8 }
  0x73   : > { %p523_p10 = scmp.ne.s32.totalorder %s893_s3, %s522_s10  ;;  %p530_p5 = scmp.lt.s32.totalorder %s840_s9, %s522_s10 }
  0x75   : > { %p524_p11 = pnand %p523_p10, %p397_p6  ;;  %p531_p13 = por %p530_p5, %p529_p7 }
  0x77   : > { %p525_p12 = pneg %p524_p11 }
  0x79   : > { %p532_p0 = pnand %p531_p13, %p525_p12 }
  0x7b   : > { %535 = shalt.err (!%p532_p0)  }
  0x7c   : > { %369 = dma.hbm_to_vmem [thread:$0]  (%p397_p6), %s104_s4, 16, %s893_s3, [#allocation2 + $0x3] }
  0x7d   : > { %s139_s17 = scalar_lea.vmem %s799_s27, 5 [#allocation5]  ;;  %s1121_s0 = smov (!%p397_p6, %s135_s0), 0 }
  0x7e   : > { %s373_s6 = scalar_select %p397_p6, [#allocation4], [#allocation30] }
  0x7f   : > { %s339_s7 = sshll.u32 %s918_s26, 4  ;;  %s148_s11 = sshll.u32 %s139_s17, 4  ;;  %s149_s11 = int_to_ptr.vmem [resolvable:$true] %s148_s11 }
  0x80   : > { %s121_s24 = scalar_lea.hbm %s1100_s1, %s339_s7  ;;  %s948_s16 = sld [smem:[%s373_s6 + %s1121_s0]] }
  0x81   : > { %s536_s30 = scalar_lea.hbm %s121_s24, 16  ;;  %p541_p8 = scmp.lt.s32.totalorder %s121_s24, %s1100_s1 }
  0x82   : > { %p537_p1 = scmp.ne.s32.totalorder %s121_s24, %s536_s30  ;;  %p542_p9 = scmp.lt.s32.totalorder %s827_s25, %s536_s30 }
  0x84   : > { %p538_p2 = pnand %p537_p1, %p397_p6  ;;  %p543_p10 = por %p542_p9, %p541_p8 }
  0x86   : > { %p539_p3 = pneg %p538_p2 }
  0x88   : > { %p544_p11 = pnand %p543_p10, %p539_p3 }
  0x8a   : > { %547 = shalt.err (!%p544_p11)  }
  0x8b   : > { %s548_s26 = scalar_lea.vmem %s132_s22, 16  ;;  %p555_p13 = scmp.lt.s32.totalorder %s132_s22, %s837_s8 }
  0x8c   : > { %p549_p12 = scmp.ne.s32.totalorder %s132_s22, %s548_s26  ;;  %p556_p0 = scmp.lt.s32.totalorder %s840_s9, %s548_s26 }
  0x8e   : > { %p550_p7 = pnand %p549_p12, %p397_p6  ;;  %p557_p1 = por %p556_p0, %p555_p13 }
  0x90   : > { %p551_p5 = pneg %p550_p7 }
  0x92   : > { %p558_p2 = pnand %p557_p1, %p551_p5 }
  0x94   : > { %561 = shalt.err (!%p558_p2)  }
  0x95   : > { %372 = dma.hbm_to_vmem [thread:$0]  (%p397_p6), %s121_s24, 16, %s132_s22, [#allocation2 + $0x4] }
  0x96   : > { %s152_s0 = sadd.s32 6, %s791_s23  ;;  %s156_s17 = scalar_lea.vmem %s799_s27, 6 [#allocation5] }
  0x97   : > { %s376_s10 = scalar_select %p397_p6, [#allocation4], [#allocation31] }
  0x98   : > { %s1123_s0 = smov (!%p397_p6, %s152_s0), 0  ;;  %s169_s6 = sadd.s32 7, %s791_s23 }
  0x99   : > { %s340_s7 = sshll.u32 %s948_s16, 4  ;;  %s153_s29 = sld [smem:[%s376_s10 + %s1123_s0]] }
  0x9a   : > { %s138_s3 = scalar_lea.hbm %s1100_s1, %s340_s7  ;;  %s165_s4 = sshll.u32 %s156_s17, 4  ;;  %s166_s4 = int_to_ptr.vmem [resolvable:$true] %s165_s4 }
  0x9b   : > { %s562_s26 = scalar_lea.hbm %s138_s3, 16  ;;  %p567_p10 = scmp.lt.s32.totalorder %s138_s3, %s1100_s1 }
  0x9c   : > { %p563_p3 = scmp.ne.s32.totalorder %s138_s3, %s562_s26  ;;  %p568_p11 = scmp.lt.s32.totalorder %s827_s25, %s562_s26 }
  0x9e   : > { %p564_p8 = pnand %p563_p3, %p397_p6  ;;  %p569_p12 = por %p568_p11, %p567_p10 }
  0xa0   : > { %p565_p9 = pneg %p564_p8 }
  0xa2   : > { %p570_p7 = pnand %p569_p12, %p565_p9 }
  0xa4   : > { %573 = shalt.err (!%p570_p7)  }
  0xa5   : > { %s574_s23 = scalar_lea.vmem %s149_s11, 16  ;;  %p581_p1 = scmp.lt.s32.totalorder %s149_s11, %s837_s8 }
  0xa6   : > { %p575_p5 = scmp.ne.s32.totalorder %s149_s11, %s574_s23  ;;  %p582_p2 = scmp.lt.s32.totalorder %s840_s9, %s574_s23 }
  0xa8   : > { %p576_p13 = pnand %p575_p5, %p397_p6  ;;  %p583_p3 = por %p582_p2, %p581_p1 }
  0xaa   : > { %p577_p0 = pneg %p576_p13 }
  0xac   : > { %p584_p8 = pnand %p583_p3, %p577_p0 }
  0xae   : > { %587 = shalt.err (!%p584_p8)  }
  0xaf   : > { %375 = dma.hbm_to_vmem [thread:$0]  (%p397_p6), %s138_s3, 16, %s149_s11, [#allocation2 + $0x5] }
  0xb0   : > { %s379_s16 = scalar_select %p397_p6, [#allocation4], [#allocation32] }
  0xb1   : > { %s1125_s6 = smov (!%p397_p6, %s169_s6), 0  ;;  %s341_s0 = sshll.u32 %s153_s29, 4 }
  0xb2   : > { %s173_s10 = scalar_lea.vmem %s799_s27, 7 [#allocation5]  ;;  %s155_s5 = scalar_lea.hbm %s1100_s1, %s341_s0 }
  0xb3   : > { %s170_s30 = sld [smem:[%s379_s16 + %s1125_s6]]  ;;  %s588_s26 = scalar_lea.hbm %s155_s5, 16 }
  0xb4   : > { %p589_p9 = scmp.ne.s32.totalorder %s155_s5, %s588_s26  ;;  %p593_p12 = scmp.lt.s32.totalorder %s155_s5, %s1100_s1 }
  0xb5   : > { %p594_p7 = scmp.lt.s32.totalorder %s827_s25, %s588_s26 }
  0xb6   : > { %p590_p10 = pnand %p589_p9, %p397_p6 }
  0xb7   : > { %p595_p5 = por %p594_p7, %p593_p12 }
  0xb8   : > { %p591_p11 = pneg %p590_p10 }
  0xba   : > { %p596_p13 = pnand %p595_p5, %p591_p11 }
  0xbc   : > { %599 = shalt.err (!%p596_p13)  }
  0xbd   : > { %s600_s11 = scalar_lea.vmem %s166_s4, 16  ;;  %p607_p3 = scmp.lt.s32.totalorder %s166_s4, %s837_s8 }
  0xbe   : > { %p601_p0 = scmp.ne.s32.totalorder %s166_s4, %s600_s11  ;;  %p608_p8 = scmp.lt.s32.totalorder %s840_s9, %s600_s11 }
  0xc0   : > { %p602_p1 = pnand %p601_p0, %p397_p6  ;;  %p609_p9 = por %p608_p8, %p607_p3 }
  0xc2   : > { %p603_p2 = pneg %p602_p1 }
  0xc4   : > { %p610_p10 = pnand %p609_p9, %p603_p2 }
  0xc6   : > { %613 = shalt.err (!%p610_p10)  }
  0xc7   : > { %378 = dma.hbm_to_vmem [thread:$0]  (%p397_p6), %s155_s5, 16, %s166_s4, [#allocation2 + $0x6] }
  0xc8   : > { %s182_s27 = sshll.u32 %s173_s10, 4  ;;  %s342_s6 = sshll.u32 %s170_s30, 4  ;;  %s183_s27 = int_to_ptr.vmem [resolvable:$true] %s182_s27 }
  0xc9   : > { %s172_s23 = scalar_lea.hbm %s1100_s1, %s342_s6 }
  0xca   : > { %s614_s16 = scalar_lea.hbm %s172_s23, 16  ;;  %p619_p5 = scmp.lt.s32.totalorder %s172_s23, %s1100_s1 }
  0xcb   : > { %p615_p11 = scmp.ne.s32.totalorder %s172_s23, %s614_s16  ;;  %p620_p13 = scmp.lt.s32.totalorder %s827_s25, %s614_s16 }
  0xcd   : > { %p616_p12 = pnand %p615_p11, %p397_p6  ;;  %p621_p0 = por %p620_p13, %p619_p5 }
  0xcf   : > { %p617_p7 = pneg %p616_p12 }
  0xd1   : > { %p622_p1 = pnand %p621_p0, %p617_p7 }
  0xd3   : > { %625 = shalt.err (!%p622_p1)  }
  0xd4   : > { %s626_s4 = scalar_lea.vmem %s183_s27, 16  ;;  %p633_p9 = scmp.lt.s32.totalorder %s183_s27, %s837_s8 }
  0xd5   : > { %p627_p2 = scmp.ne.s32.totalorder %s183_s27, %s626_s4  ;;  %p634_p10 = scmp.lt.s32.totalorder %s840_s9, %s626_s4 }
  0xd7   : > { %p628_p3 = pnand %p627_p2, %p397_p6  ;;  %p635_p11 = por %p634_p10, %p633_p9 }
  0xd9   : > { %p629_p8 = pneg %p628_p3 }
  0xdb   : > { %p636_p12 = pnand %p635_p11, %p629_p8 }
  0xdd   : > { %639 = shalt.err (!%p636_p12)  }
  0xde   : > { %381 = dma.hbm_to_vmem [thread:$0]  (%p397_p6), %s172_s23, 16, %s183_s27, [#allocation2 + $0x7] }
  0xdf   : > { %683 = dma.done.wait (%p397_p6), [#allocation2], 16 }
  0xe0   : > { %685 = vsyncadd (%p397_p6), [#allocation2], 4294967280 }
  0xe1   : > { %687 = dma.done.wait (%p397_p6), [#allocation2 + $0x1], 16 }
  0xe2   : > { %689 = vsyncadd (%p397_p6), [#allocation2 + $0x1], 4294967280 }
  0xe3   : > { %691 = dma.done.wait (%p397_p6), [#allocation2 + $0x2], 16 }
  0xe4   : > { %693 = vsyncadd (%p397_p6), [#allocation2 + $0x2], 4294967280 }
  0xe5   : > { %695 = dma.done.wait (%p397_p6), [#allocation2 + $0x3], 16 }
  0xe6   : > { %697 = vsyncadd (%p397_p6), [#allocation2 + $0x3], 4294967280 }
  0xe7   : > { %699 = dma.done.wait (%p397_p6), [#allocation2 + $0x4], 16 }
  0xe8   : > { %701 = vsyncadd (%p397_p6), [#allocation2 + $0x4], 4294967280 }
  0xe9   : > { %703 = dma.done.wait (%p397_p6), [#allocation2 + $0x5], 16 }
  0xea   : > { %705 = vsyncadd (%p397_p6), [#allocation2 + $0x5], 4294967280 }
  0xeb   : > { %707 = dma.done.wait (%p397_p6), [#allocation2 + $0x6], 16 }
  0xec   : > { %709 = vsyncadd (%p397_p6), [#allocation2 + $0x6], 4294967280 }
  0xed   : > { %711 = dma.done.wait (%p397_p6), [#allocation2 + $0x7], 16 }
  0xee   : > { %713 = vsyncadd (%p397_p6), [#allocation2 + $0x7], 4294967280  ;;  %s344_s25 = sshll.u32 %s728_s14, 7  ;;  %p1060_p7 = pnand %p397_p6, %p778_p4 }
  0xef   : > { %s214_s5 = scalar_lea.hbm %s1101_s2, %s344_s25  ;;  %s228_s26 = sand.u32 1, %s720_s12  }
  0xf0   : > { %s203_s22 = scalar_lea.sflag [#allocation6], %s49_s21  ;;  %s640_s24 = scalar_lea.vmem %s803_s28, 128 }
  0xf1   : > { %p641_p13 = scmp.ne.s32.totalorder %s803_s28, %s640_s24  ;;  %p642_p0 = pneg %p1060_p7 }
  0xf2   : > { %p649_p3 = scmp.lt.s32.totalorder %s840_s9, %s640_s24  ;;  %p1106_p8 = scmp.lt.s32.totalorder %s803_s28, %s837_s8 }
  0xf3   : > { %p643_p1 = pnand %p642_p0, %p641_p13 }
  0xf4   : > { %p650_p9 = por %p649_p3, %p1106_p8 }
  0xf5   : > { %p644_p2 = pneg %p643_p1 }
  0xf7   : > { %p651_p10 = pnand %p650_p9, %p644_p2 }
  0xf9   : > { %654 = shalt.err (!%p651_p10)
}
  0xfa   : > { %s655_s19 = scalar_lea.hbm %s214_s5, 128  ;;  %s660_s12 = scalar_lea.hbm %s1101_s2, 256 }
  0xfb   : > { %p656_p4 = scmp.ne.s32.totalorder %s214_s5, %s655_s19  ;;  %p661_p12 = scmp.lt.s32.totalorder %s214_s5, %s1101_s2 }
  0xfc   : > { %p662_p5 = scmp.lt.s32.totalorder %s660_s12, %s655_s19 }
  0xfd   : > { %p658_p6 = pnand %p656_p4, %p642_p0 }
  0xfe   : > { %p663_p13 = por %p662_p5, %p661_p12 }
  0xff   : > { %p659_p11 = pneg %p658_p6 }
 0x101   : > { %p664_p1 = pnand %p663_p13, %p659_p11 }
 0x103   : > { %667 = shalt.err (!%p664_p1)
}
 0x104   : > { %392 = dma.vmem_to_hbm [thread:$0]  (!%p1060_p7), %s803_s28, 128, %s214_s5, %s203_s22  }
 0x105   : > { %p1107_p0 = scmp.ne.s32.totalorder %s1104_s20, 0  ;;  %p1108_p2 = scmp.ge.s32.totalorder %s728_s14, 1 }
 0x106   : > { %s229_s8 = scalar_lea.sflag [#allocation6], %s228_s26 }
 0x107   : > { %p394_p3 = pnand %p1108_p2, %p1107_p0 }
 0x109   : > { %p395_p8 = pneg %p394_p3 }
 0x10b   : > { %715 = dma.done.wait (%p395_p8), %s229_s8, 128  }
 0x10c   : > { %717 = vsyncadd (%p395_p8), %s229_s8, 4294967168  ;;  %p16_p5 = scmp.ge.s32.totalorder %s767_s15, 3   ;;  %s1109_s12 = smov %s724_s13 }
 0x10d   : > { %s1110_s13 = smov %s776_s18  ;;  %s1111_s14 = smov %s767_s15 }
 0x10e   :  { %18 = sbr.rel (!%p16_p5) target bundleno = 8 (0x8), region = 105 }
 0x113   :  { %234 = vsyncpa [#allocation6], 1 }
 0x114   :  { %236 = vsyncpa [#allocation6 + $0x1], 1 }
 0x115   :  { %237 = vsyncmov [#allocation2] }
 0x118   :  { %s238_s14 = vpop.sfrf %237 }
 0x119   :  { %p347_p7 = scmp.ne.s32.totalorder %s238_s14, 0 }
 0x11b   :  { %242 = shalt.err (%p347_p7)  }
 0x11c   :  { %244 = vsyncmov [#allocation2 + $0x1] }
 0x11f   :  { %s245_s20 = vpop.sfrf %244 }
 0x120   :  { %p348_p9 = scmp.ne.s32.totalorder %s245_s20, 0 }
 0x122   :  { %249 = shalt.err (%p348_p9)  }
 0x123   :  { %251 = vsyncmov [#allocation2 + $0x2] }
 0x126   :  { %s252_s28 = vpop.sfrf %251 }
 0x127   :  { %p349_p10 = scmp.ne.s32.totalorder %s252_s28, 0 }
 0x129   :  { %256 = shalt.err (%p349_p10)  }
 0x12a   :  { %258 = vsyncmov [#allocation2 + $0x3] }
 0x12d   :  { %s259_s9 = vpop.sfrf %258 }
 0x12e   :  { %p350_p4 = scmp.ne.s32.totalorder %s259_s9, 0 }
 0x130   :  { %263 = shalt.err (%p350_p4)  }
 0x131   :  { %265 = vsyncmov [#allocation2 + $0x4] }
 0x134   :  { %s266_s15 = vpop.sfrf %265 }
 0x135   :  { %p351_p6 = scmp.ne.s32.totalorder %s266_s15, 0 }
 0x137   :  { %270 = shalt.err (%p351_p6)  }
 0x138   :  { %272 = vsyncmov [#allocation2 + $0x5] }
 0x13b   :  { %s273_s1 = vpop.sfrf %272 }
 0x13c   :  { %p352_p11 = scmp.ne.s32.totalorder %s273_s1, 0 }
 0x13e   :  { %277 = shalt.err (%p352_p11)  }
 0x13f   :  { %279 = vsyncmov [#allocation2 + $0x6] }
 0x142   :  { %s280_s2 = vpop.sfrf %279 }
 0x143   :  { %p353_p12 = scmp.ne.s32.totalorder %s280_s2, 0 }
 0x145   :  { %284 = shalt.err (%p353_p12)  }
 0x146   :  { %286 = vsyncmov [#allocation2 + $0x7] }
 0x149   :  { %s287_s13 = vpop.sfrf %286 }
 0x14a   :  { %p354_p13 = scmp.ne.s32.totalorder %s287_s13, 0 }
 0x14c   :  { %291 = shalt.err (%p354_p13)  }

</bundles_post_ra>
